<compile_context>
chip_gen: v5e
topology: v5e:2x2
jax: 0.10.0
libtpu: 0.0.40
codegen_flags: <defaults>
</compile_context>

<pallas_src>
import functools

import jax
import jax.numpy as jnp
from jax.experimental import pallas as pl
from jax.experimental.pallas import tpu as pltpu


_LANE = 128          # lane width of a vreg / VMEM lane tile
_SUBLANE_F32 = 8     # sublanes per vreg for 32-bit dtypes


def _sublane_multiple(itemsize: int) -> int:
    """Native sublane packing for a dtype: 8 (f32), 16 (bf16), 32 (int8/fp8)."""
    return _SUBLANE_F32 * max(1, 4 // max(1, itemsize))


def _round_up(v: int, m: int) -> int:
    return ((v + m - 1) // m) * m


def _padded_block_bytes(rows: int, cols: int, itemsize: int) -> int:
    """Actual VMEM footprint of a (rows, cols) block: lane + sublane padding."""
    sub = _sublane_multiple(itemsize)
    return _round_up(rows, sub) * _round_up(cols, _LANE) * itemsize


def _pick_row_tile(rows: int, hw: int, itemsize: int, max_block_bytes: int) -> int:
    """Largest sublane-multiple row tile whose *padded* block fits the cap."""
    sub = _sublane_multiple(itemsize)
    padded_bytes_per_row = max(1, _round_up(hw, _LANE) * itemsize)
    max_rows = max(sub, (max_block_bytes // padded_bytes_per_row) // sub * sub)
    # If everything fits in one block, use the full extent (always legal).
    return rows if rows <= max_rows else int(max_rows)


def _default_block_cap() -> int:
    """Padded-block-byte cap per generation (review items: v7x larger, v5e/v6e ~6 MiB)."""
    try:
        kind = jax.devices()[0].device_kind.lower()
    except Exception:  # pragma: no cover - defensive; fall back to conservative cap
        kind = ""
    if "v7" in kind:
        return 12 << 20   # amortize per-step overhead against 3.2 TB/s HBM
    return 6 << 20        # v5e/v6e: already ~roofline at a few MiB


def _gap_kernel(x_ref, o_ref, *, inv_hw: float):
    # x_ref: (r_tile, H*W) block in VMEM; o_ref: (r_tile, 1) block in VMEM.
    # Fused f32 accumulation (no materialized f32 copy of the whole tile).
    s = jnp.sum(x_ref[...], axis=-1, dtype=jnp.float32, keepdims=True)
    o_ref[...] = (s * inv_hw).astype(o_ref.dtype)


def global_average_pooling(x: jax.Array, *, max_block_bytes: int | None = None) -> jax.Array:
    """x: (B, C, H, W) -> (B, C), mean over the last two (spatial) axes."""
    B, C, H, W = x.shape
    rows = B * C
    hw = H * W
    itemsize = x.dtype.itemsize

    if max_block_bytes is None:
        max_block_bytes = _default_block_cap()
    # Keep 2x buffers + headroom well inside the smallest per-TC VMEM (v7x: 64 MiB).
    max_block_bytes = min(int(max_block_bytes), 24 << 20)

    # Free reshape (NCHW is contiguous): lane-dense (rows, H*W) layout, and every
    # grid block is a fully contiguous run of HBM bytes.
    x2 = x.reshape(rows, hw)

    r_tile = _pick_row_tile(rows, hw, itemsize, max_block_bytes)
    grid = (pl.cdiv(rows, r_tile),)

    # VMEM budget from the *padded* footprints (input + output, double-buffered)
    # plus headroom for compiler-internal scratch.
    in_block_bytes = _padded_block_bytes(r_tile, hw, itemsize)
    out_block_bytes = _padded_block_bytes(r_tile, 1, itemsize)
    vmem_limit = 2 * in_block_bytes + 2 * out_block_bytes + (4 << 20)
    vmem_limit = int(max(16 << 20, min(vmem_limit, 56 << 20)))

    out2 = pl.pallas_call(
        functools.partial(_gap_kernel, inv_hw=1.0 / float(hw)),
        out_shape=jax.ShapeDtypeStruct((rows, 1), x.dtype),
        grid=grid,
        # Lane axis (hw) is always the full extent, so the divisor is exact and
        # no cross-grid accumulator is needed; only the row axis is tiled.
        in_specs=[pl.BlockSpec((r_tile, hw), lambda i: (i, 0))],
        out_specs=pl.BlockSpec((r_tile, 1), lambda i: (i, 0)),
        compiler_params=pltpu.CompilerParams(
            # Row tiles are independent. (v7x: see CORE_PARALLEL note in header.)
            dimension_semantics=("parallel",),
            vmem_limit_bytes=vmem_limit,
        ),
        cost_estimate=pl.CostEstimate(
            flops=int(rows) * int(hw),
            transcendentals=0,
            bytes_accessed=int(rows) * int(hw) * itemsize + int(rows) * itemsize,
        ),
    )(x2)

    return out2.reshape(B, C)


if __name__ == "__main__":
    key = jax.random.PRNGKey(0)

    # Primary (small) case, matching the PyTorch module's expected layout.
    x = jax.random.normal(key, (2, 4, 16, 16), dtype=jnp.float32)
    out = jax.block_until_ready(global_average_pooling(x))
    ref = jnp.mean(x, axis=(-2, -1))
    assert out.shape == (2, 4)
    assert out.dtype == x.dtype
    assert jnp.allclose(out, ref, atol=1e-5, rtol=1e-5)

    # Multi-step row-tiled grid (including a partial, masked final block) with a
    # lane-padded H*W (192 -> 256 lanes): exercises the padded-byte tile picker.
    x2 = jax.random.normal(jax.random.PRNGKey(0), (3, 5, 8, 24), dtype=jnp.float32)
    out2 = jax.block_until_ready(
        global_average_pooling(x2, max_block_bytes=4096)  # -> r_tile=8, grid=(2,)
    )
    ref2 = jnp.mean(x2, axis=(-2, -1))
    assert out2.shape == (3, 5)
    assert jnp.allclose(out2, ref2, atol=1e-5, rtol=1e-5)

    # bf16 input: exercises dtype-aware sublane rounding + f32 accumulation.
    x3 = jax.random.normal(jax.random.PRNGKey(0), (2, 4, 14, 14), dtype=jnp.bfloat16)
    out3 = jax.block_until_ready(global_average_pooling(x3))
    ref3 = jnp.mean(x3.astype(jnp.float32), axis=(-2, -1)).astype(jnp.bfloat16)
    assert out3.shape == (2, 4)
    assert out3.dtype == jnp.bfloat16
    assert jnp.allclose(out3.astype(jnp.float32), ref3.astype(jnp.float32),
                        atol=2e-2, rtol=2e-2)

    print("KERNEL_OK")
</pallas_src>

<mosaic_0001>
module attributes {stable_mosaic.version = 11 : i64} {
  func.func @_gap_kernel(%arg0: i32, %arg1: memref<8x256xf32, #tpu.memory_space<vmem>>, %arg2: memref<8x1xf32, #tpu.memory_space<vmem>>) attributes {dimension_semantics = [#tpu.dimension_semantics<parallel>], iteration_bounds = array<i64: 1>, scalar_prefetch = 0 : i64, scratch_operands = 0 : i64, tpu.core_type = #tpu.core_type<tc>, window_params = [{transform_indices = @transform_0, window_bounds = array<i64: 8, 256>}, {transform_indices = @transform_1, window_bounds = array<i64: 8, 1>}]} {
    %c0 = arith.constant 0 : index
    %c0_0 = arith.constant 0 : index
    %0 = vector.load %arg1[%c0, %c0_0] : memref<8x256xf32, #tpu.memory_space<vmem>>, vector<8x256xf32>
    %cst = arith.constant dense<0.000000e+00> : vector<8xf32>
    %1 = vector.multi_reduction <add>, %0, %cst [1] : vector<8x256xf32> to vector<8xf32>
    %2 = vector.shape_cast %1 : vector<8xf32> to vector<8x1xf32>
    %cst_1 = arith.constant 3.906250e-03 : f32
    %3 = vector.broadcast %cst_1 : f32 to vector<8x1xf32>
    %4 = arith.mulf %2, %3 : vector<8x1xf32>
    %c0_2 = arith.constant 0 : index
    %c0_3 = arith.constant 0 : index
    %5 = vector.load %arg2[%c0_2, %c0_3] : memref<8x1xf32, #tpu.memory_space<vmem>>, vector<8x1xf32>
    tpu.vector_store %arg2[%c0_2, %c0_3], %4 {strides = array<i32>} : memref<8x1xf32, #tpu.memory_space<vmem>>, vector<8x1xf32>,
    return
  }
  func.func @transform_0(%arg0: i32) -> (i32, i32) {
    %c0_i32 = arith.constant 0 : i32
    %c0_i32_0 = arith.constant 0 : i32
    return %arg0, %c0_i32 : i32, i32
  }
  func.func @transform_1(%arg0: i32) -> (i32, i32) {
    %c0_i32 = arith.constant 0 : i32
    %c0_i32_0 = arith.constant 0 : i32
    return %arg0, %c0_i32 : i32, i32
  }
}

</mosaic_0001>

<bundles_post_ra>
// kernel: tpu_custom_call.1
= control target key start
LH: loop header
LB: loop body
LE: loop exit
PB: predicated region body
PF: predicated region fallthrough
CT: control target
= control target key end

     0   :  { %6 = vsyncpa [#allocation3], 0  ;;  %s62_s9 = smov [#allocation2]   ;;  %s79_s0 = inlined_call_operand.hbm [shape: f32[8,256], index: 0, kind: input, shape index: {}]   ;;  %s80_s1 = inlined_call_operand.vmem [shape: f32[8,1], index: 1, kind: output, shape index: {}]  }
   0x1   :  { %s12_s8 = sshll.u32 %s79_s0, 4  ;;  %s14_s10 = sshll.u32 %s62_s9, 4  ;;  %s13_s8 = int_to_ptr.hbm [resolvable:$true] %s12_s8  ;;  %s15_s10 = int_to_ptr.vmem [resolvable:$true] %s14_s10 }
   0x2   :  { %17 = dma.hbm_to_vmem [thread:$0]  %s13_s8, 256, %s15_s10, [#allocation3]  }
   0x3   :  { %60 = dma.done.wait [#allocation3], 256  }
   0x4   :  { %61 = vsyncadd [#allocation3], 4294967040  ;;  %v22_v0 = vld [vmem:[#allocation2] sm:$0xff]  ;;  %v23_v1 = vld [vmem:[#allocation2 + $0x8] sm:$0xff]  ;;  %vm28_vm0 = vcmask 7168  }
   0x5   :  { %v24_v2 = vadd.f32 %v23_v1, %v22_v0 }
   0x7   :  { %25 = vadd.xlane.f32.xlu0 %v24_v2 }
  0x7a   :  { %v26_v3 = vpop.xlane.xlu0 %25 }
  0x7b   :  { %v27_v4 = vmul.f32 0.00390625, %v26_v3 }
  0x7d   :  { %29 = vst.msk [vmem:[%s80_s1] sm:$0xff] %vm28_vm0, %v27_v4 }
  0x7e   :  { %34 = vsyncpa [#allocation3], 1 }

</bundles_post_ra>
